<compile_context>
chip_gen: v7x
topology: tpu7x:2x2x1
jax: 0.10.0
libtpu: 0.0.40
codegen_flags: <defaults>
</compile_context>

<pallas_src>
import jax
import jax.numpy as jnp
from jax.experimental import pallas as pl
from jax.experimental.pallas import tpu as pltpu


def _round_up(v, m):
    return ((v + m - 1) // m) * m


def graph_layer_kernel(adj_ref, xk_ref, feat_ref, wmsg_ref, wfeat_ref,
                       out_ref, acc_ref):
    """Grid = (row tiles of destination nodes, K tiles of source nodes).

    adj_ref  : [TN, TK]        bf16 adjacency counts (dst rows of this tile, src cols of this K slab)
    xk_ref   : [TK, C_in]      node features of this K slab (f32)
    feat_ref : [TN, F]         per-destination packed features [x | ea_dst | deg | 1]
    wmsg_ref : [C_in, C_out_p] message weight (single-buffered constant)
    wfeat_ref: [F, C_out_p]    packed weight  [w_root; w_lin@w_msg; b_lin@w_msg; b_out]
    out_ref  : [TN, C_out_p]   relu(...)  -- lane-dense store
    acc_ref  : [TN, C_in]      f32 VMEM accumulator for adj @ x
    """
    k = pl.program_id(1)

    @pl.when(k == 0)
    def _init():
        acc_ref[...] = jnp.zeros_like(acc_ref)

    # Neighbor-feature partial sum for this K slab (bf16 adj cast up -> exact counts).
    acc_ref[...] += jnp.dot(adj_ref[...].astype(jnp.float32), xk_ref[...],
                            preferred_element_type=jnp.float32)

    @pl.when(k == pl.num_programs(1) - 1)
    def _finalize():
        # root term + fused edge-attr term + all biases, in one matmul ...
        h = jnp.dot(feat_ref[...], wfeat_ref[...],
                    preferred_element_type=jnp.float32)
        # ... plus the aggregated-neighbor term.
        h = h + jnp.dot(acc_ref[...], wmsg_ref[...],
                        preferred_element_type=jnp.float32)
        out_ref[...] = jnp.maximum(h, 0.0)


def graph_layer_forward(x, edge_index, edge_attr,
                        w_lin, b_lin, w_root, w_msg, b_out):
    """Plain-JAX glue: O(E) scatter preprocessing + one tiled pallas_call."""
    n, c_in = x.shape
    a_dim = edge_attr.shape[1]
    c_out = w_root.shape[1]
    src, dst = edge_index[0], edge_index[1]

    # ---- O(E) preprocessing (replaces dense [E,N] one-hot matmuls) ----
    adj = jnp.zeros((n, n), jnp.float32).at[dst, src].add(1.0)          # counts j->i
    ea_dst = jnp.zeros((n, a_dim), jnp.float32).at[dst].add(edge_attr)  # presum per dst
    deg = jnp.zeros((n, 1), jnp.float32).at[dst].add(1.0)               # in-degree

    # ---- algebraic fusion: Linear(edge_attr) into the message weight; biases into feat matmul ----
    w_fea = w_lin @ w_msg          # [A, C_out]
    b_fea = b_lin @ w_msg          # [1, C_out]  (per-edge bias -> deg_i * b_fea via feat's deg column)
    feat = jnp.concatenate(
        [x, ea_dst, deg, jnp.ones((n, 1), jnp.float32)], axis=1)        # [N, F]
    w_feat = jnp.concatenate([w_root, w_fea, b_fea, b_out], axis=0)     # [F, C_out]
    f_dim = feat.shape[1]

    # ---- TPU tiling: lane-dense output, row tiles up to 256, K tiles up to 512 ----
    c_out_pad = _round_up(c_out, 128)
    tn = min(256, _round_up(n, 8))
    n_rows = _round_up(n, tn)
    n_cols = _round_up(n, 128)
    tk = 128
    for cand in (512, 384, 256, 128):
        if n_cols % cand == 0:
            tk = cand
            break

    def pad2(a, rows, cols):
        return jnp.pad(a, ((0, rows - a.shape[0]), (0, cols - a.shape[1])))

    # Adjacency is the dominant HBM stream -> bf16 (counts < 256 are exact in bf16).
    adj_p = pad2(adj, n_rows, n_cols).astype(jnp.bfloat16)
    xk_p = pad2(x, n_cols, c_in)
    feat_p = pad2(feat, n_rows, f_dim)
    wmsg_p = pad2(w_msg, c_in, c_out_pad)
    wfeat_p = pad2(w_feat, f_dim, c_out_pad)

    grid = (n_rows // tn, n_cols // tk)

    out = pl.pallas_call(
        graph_layer_kernel,
        out_shape=jax.ShapeDtypeStruct((n_rows, c_out_pad), jnp.float32),
        grid=grid,
        in_specs=[
            pl.BlockSpec((tn, tk), lambda i, k: (i, k)),           # adjacency tile
            pl.BlockSpec((tk, c_in), lambda i, k: (k, 0)),         # x K-slab
            pl.BlockSpec((tn, f_dim), lambda i, k: (i, 0)),        # packed per-dst features
            pl.BlockSpec((c_in, c_out_pad), lambda i, k: (0, 0),   # w_msg (constant)
                         pipeline_mode=pl.Buffered(1)),
            pl.BlockSpec((f_dim, c_out_pad), lambda i, k: (0, 0),  # packed weight (constant)
                         pipeline_mode=pl.Buffered(1)),
        ],
        out_specs=pl.BlockSpec((tn, c_out_pad), lambda i, k: (i, 0)),
        scratch_shapes=[pltpu.VMEM((tn, c_in), jnp.float32)],      # adj@x accumulator
        compiler_params=pltpu.CompilerParams(
            dimension_semantics=("parallel", "arbitrary"),
            vmem_limit_bytes=48 * 1024 * 1024,                     # fits v5e/v6e/v7x budgets
        ),
    )(adj_p, xk_p, feat_p, wmsg_p, wfeat_p)

    return out[:n, :c_out]


def graph_layer_reference(x, edge_index, edge_attr,
                          w_lin, b_lin, w_root, w_msg, b_out):
    src = edge_index[0]
    dst = edge_index[1]
    e_proj = edge_attr @ w_lin + b_lin
    msg = x[src] + e_proj
    msg_out = msg @ w_msg
    agg = jnp.zeros((x.shape[0], w_root.shape[1]), jnp.float32).at[dst].add(msg_out)
    return jnp.maximum(x @ w_root + agg + b_out, 0.0)


if __name__ == "__main__":
    # Small synthetic graph, consistent with GraphLayer's forward signature.
    N_NODES = 16       # number of graph nodes
    C_IN = 8           # node feature dim (in_channels)
    C_OUT = 16         # out_channels of the MessagePassing net
    N_EDGES = 32
    EDGE_ATTR_DIM = 4
    MATCH_SIZE = C_IN  # Linear(edge_attr_dim, match_size); match_size == in_channels

    key = jax.random.PRNGKey(0)
    ks = jax.random.split(key, 8)

    x = jax.random.normal(ks[0], (N_NODES, C_IN), dtype=jnp.float32)
    src = jax.random.randint(ks[1], (N_EDGES,), 0, N_NODES)
    dst = jax.random.randint(ks[2], (N_EDGES,), 0, N_NODES)
    edge_index = jnp.stack([src, dst], axis=0).astype(jnp.int32)      # [2, E]
    edge_attr = jax.random.normal(ks[3], (N_EDGES, EDGE_ATTR_DIM), dtype=jnp.float32)

    # Parameters stored pre-transposed so the kernel does plain matmuls.
    w_lin = jax.random.normal(ks[4], (EDGE_ATTR_DIM, MATCH_SIZE), dtype=jnp.float32) * 0.1
    b_lin = jnp.full((1, MATCH_SIZE), 0.01, dtype=jnp.float32)
    w_root = jax.random.normal(ks[5], (C_IN, C_OUT), dtype=jnp.float32) * 0.1
    w_msg = jax.random.normal(ks[6], (C_IN, C_OUT), dtype=jnp.float32) * 0.1
    b_out = jnp.full((1, C_OUT), 0.02, dtype=jnp.float32)

    out = graph_layer_forward(x, edge_index, edge_attr,
                              w_lin, b_lin, w_root, w_msg, b_out)
    out = jax.block_until_ready(out)

    ref = graph_layer_reference(x, edge_index, edge_attr,
                                w_lin, b_lin, w_root, w_msg, b_out)
    assert out.shape == (N_NODES, C_OUT)
    assert jnp.allclose(out, ref, atol=1e-4, rtol=1e-4), "mismatch vs JAX reference"

    print("KERNEL_OK")
</pallas_src>

<mosaic_0001>
module attributes {stable_mosaic.version = 11 : i64} {
  func.func @graph_layer_kernel(%arg0: i32, %arg1: i32, %arg2: memref<16x128xbf16, #tpu.memory_space<vmem>>, %arg3: memref<128x8xf32, #tpu.memory_space<vmem>>, %arg4: memref<16x14xf32, #tpu.memory_space<vmem>>, %arg5: memref<8x128xf32, #tpu.memory_space<vmem>>, %arg6: memref<14x128xf32, #tpu.memory_space<vmem>>, %arg7: memref<16x128xf32, #tpu.memory_space<vmem>>, %arg8: memref<16x8xf32, #tpu.memory_space<vmem>>) attributes {dimension_semantics = [#tpu.dimension_semantics<parallel>, #tpu.dimension_semantics<arbitrary>], iteration_bounds = array<i64: 1, 1>, scalar_prefetch = 0 : i64, scratch_operands = 1 : i64, tpu.core_type = #tpu.core_type<tc>, window_params = [{transform_indices = @transform_0, window_bounds = array<i64: 16, 128>}, {transform_indices = @transform_1, window_bounds = array<i64: 128, 8>}, {transform_indices = @transform_2, window_bounds = array<i64: 16, 14>}, {pipeline_mode = #tpu.pipeline_mode<synchronous>, transform_indices = @transform_3, window_bounds = array<i64: 8, 128>}, {pipeline_mode = #tpu.pipeline_mode<synchronous>, transform_indices = @transform_4, window_bounds = array<i64: 14, 128>}, {transform_indices = @transform_5, window_bounds = array<i64: 16, 128>}]} {
    %c0_i32 = arith.constant 0 : i32
    %0 = arith.cmpi eq, %arg1, %c0_i32 : i32
    %1 = arith.extui %0 : i1 to i32
    %c0_i32_0 = arith.constant 0 : i32
    %2 = arith.cmpi ne, %1, %c0_i32_0 : i32
    scf.if %2 {
      %cst_10 = arith.constant 0.000000e+00 : f32
      %13 = vector.broadcast %cst_10 : f32 to vector<16x8xf32>
      %c0_11 = arith.constant 0 : index
      %c0_12 = arith.constant 0 : index
      %14 = vector.load %arg8[%c0_11, %c0_12] : memref<16x8xf32, #tpu.memory_space<vmem>>, vector<16x8xf32>
      tpu.vector_store %arg8[%c0_11, %c0_12], %13 {strides = array<i32>} : memref<16x8xf32, #tpu.memory_space<vmem>>, vector<16x8xf32>,
    } else {
    }
    %c0 = arith.constant 0 : index
    %c0_1 = arith.constant 0 : index
    %3 = vector.load %arg8[%c0, %c0_1] : memref<16x8xf32, #tpu.memory_space<vmem>>, vector<16x8xf32>
    %c0_2 = arith.constant 0 : index
    %c0_3 = arith.constant 0 : index
    %4 = vector.load %arg2[%c0_2, %c0_3] : memref<16x128xbf16, #tpu.memory_space<vmem>>, vector<16x128xbf16>
    %5 = arith.extf %4 : vector<16x128xbf16> to vector<16x128xf32>
    %c0_4 = arith.constant 0 : index
    %c0_5 = arith.constant 0 : index
    %6 = vector.load %arg3[%c0_4, %c0_5] : memref<128x8xf32, #tpu.memory_space<vmem>>, vector<128x8xf32>
    %cst = arith.constant dense<0.000000e+00> : vector<16x8xf32>
    %7 = tpu.matmul %5, %6, %cst {dimension_numbers = #tpu.dot_dimension_numbers<[1], [0], [0], [1], [0, 0, 1, 1], [], []>} : vector<16x128xf32>, vector<128x8xf32>, vector<16x8xf32> -> vector<16x8xf32>
    %8 = arith.addf %3, %7 : vector<16x8xf32>
    %c0_6 = arith.constant 0 : index
    %c0_7 = arith.constant 0 : index
    %9 = vector.load %arg8[%c0_6, %c0_7] : memref<16x8xf32, #tpu.memory_space<vmem>>, vector<16x8xf32>
    tpu.vector_store %arg8[%c0_6, %c0_7], %8 {strides = array<i32>} : memref<16x8xf32, #tpu.memory_space<vmem>>, vector<16x8xf32>,
    %c0_i32_8 = arith.constant 0 : i32
    %10 = arith.cmpi eq, %arg1, %c0_i32_8 : i32
    %11 = arith.extui %10 : i1 to i32
    %c0_i32_9 = arith.constant 0 : i32
    %12 = arith.cmpi ne, %11, %c0_i32_9 : i32
    scf.if %12 {
      %c0_10 = arith.constant 0 : index
      %c0_11 = arith.constant 0 : index
      %13 = vector.load %arg4[%c0_10, %c0_11] : memref<16x14xf32, #tpu.memory_space<vmem>>, vector<16x14xf32>
      %c0_12 = arith.constant 0 : index
      %c0_13 = arith.constant 0 : index
      %14 = vector.load %arg6[%c0_12, %c0_13] : memref<14x128xf32, #tpu.memory_space<vmem>>, vector<14x128xf32>
      %cst_14 = arith.constant dense<0.000000e+00> : vector<16x128xf32>
      %15 = tpu.matmul %13, %14, %cst_14 {dimension_numbers = #tpu.dot_dimension_numbers<[1], [0], [0], [1], [0, 0, 1, 1], [], []>} : vector<16x14xf32>, vector<14x128xf32>, vector<16x128xf32> -> vector<16x128xf32>
      %c0_15 = arith.constant 0 : index
      %c0_16 = arith.constant 0 : index
      %16 = vector.load %arg8[%c0_15, %c0_16] : memref<16x8xf32, #tpu.memory_space<vmem>>, vector<16x8xf32>
      %c0_17 = arith.constant 0 : index
      %c0_18 = arith.constant 0 : index
      %17 = vector.load %arg5[%c0_17, %c0_18] : memref<8x128xf32, #tpu.memory_space<vmem>>, vector<8x128xf32>
      %cst_19 = arith.constant dense<0.000000e+00> : vector<16x128xf32>
      %18 = tpu.matmul %16, %17, %cst_19 {dimension_numbers = #tpu.dot_dimension_numbers<[1], [0], [0], [1], [0, 0, 1, 1], [], []>} : vector<16x8xf32>, vector<8x128xf32>, vector<16x128xf32> -> vector<16x128xf32>
      %19 = arith.addf %15, %18 : vector<16x128xf32>
      %cst_20 = arith.constant 0.000000e+00 : f32
      %20 = vector.broadcast %cst_20 : f32 to vector<16x128xf32>
      %21 = arith.maximumf %19, %20 : vector<16x128xf32>
      %c0_21 = arith.constant 0 : index
      %c0_22 = arith.constant 0 : index
      %22 = vector.load %arg7[%c0_21, %c0_22] : memref<16x128xf32, #tpu.memory_space<vmem>>, vector<16x128xf32>
      tpu.vector_store %arg7[%c0_21, %c0_22], %21 {strides = array<i32>} : memref<16x128xf32, #tpu.memory_space<vmem>>, vector<16x128xf32>,
    } else {
    }
    return
  }
  func.func @transform_0(%arg0: i32, %arg1: i32) -> (i32, i32) {
    %c0_i32 = arith.constant 0 : i32
    return %arg0, %arg1 : i32, i32
  }
  func.func @transform_1(%arg0: i32, %arg1: i32) -> (i32, i32) {
    %c0_i32 = arith.constant 0 : i32
    %c0_i32_0 = arith.constant 0 : i32
    return %arg1, %c0_i32 : i32, i32
  }
  func.func @transform_2(%arg0: i32, %arg1: i32) -> (i32, i32) {
    %c0_i32 = arith.constant 0 : i32
    %c0_i32_0 = arith.constant 0 : i32
    return %arg0, %c0_i32 : i32, i32
  }
  func.func @transform_3(%arg0: i32, %arg1: i32) -> (i32, i32) {
    %c0_i32 = arith.constant 0 : i32
    %c0_i32_0 = arith.constant 0 : i32
    %c0_i32_1 = arith.constant 0 : i32
    return %c0_i32, %c0_i32_0 : i32, i32
  }
  func.func @transform_4(%arg0: i32, %arg1: i32) -> (i32, i32) {
    %c0_i32 = arith.constant 0 : i32
    %c0_i32_0 = arith.constant 0 : i32
    %c0_i32_1 = arith.constant 0 : i32
    return %c0_i32, %c0_i32_0 : i32, i32
  }
  func.func @transform_5(%arg0: i32, %arg1: i32) -> (i32, i32) {
    %c0_i32 = arith.constant 0 : i32
    %c0_i32_0 = arith.constant 0 : i32
    return %arg0, %c0_i32 : i32, i32
  }
}

</mosaic_0001>

<bundles_post_ra>
// kernel: tpu_custom_call.1
= control target key start
LH: loop header
LB: loop body
LE: loop exit
PB: predicated region body
PF: predicated region fallthrough
CT: control target
= control target key end

     0   :  { %vm25_vm0 = vcmask 64512   ;;  %v477_v5 = vmov 0.0   ;;  %s604_s0 = inlined_call_operand.vmem [shape: bf16[16,128], index: 0, kind: input, shape index: {}]   ;;  %s605_s1 = inlined_call_operand.vmem [shape: f32[128,8], index: 1, kind: input, shape index: {}]   ;;  %s606_s2 = inlined_call_operand.vmem [shape: f32[16,14], index: 2, kind: input, shape index: {}]   ;;  %s607_s3 = inlined_call_operand.vmem [shape: f32[8,128], index: 3, kind: input, shape index: {}]   ;;  %s608_s4 = inlined_call_operand.vmem [shape: f32[14,128], index: 4, kind: input, shape index: {}]   ;;  %s609_s5 = inlined_call_operand.hbm [shape: f32[16,128], index: 5, kind: output, shape index: {}]  }
   0x1   :  { %v34_v0 = vld [vmem:[%s605_s1] sm:$0xff]  ;;  %v35_v1 = vld [vmem:[%s605_s1 + $0x8] sm:$0xff]  ;;  %v36_v2 = vld [vmem:[%s605_s1 + $0x10] sm:$0xff]  ;;  %27 = vst.msk [vmem:[#allocation2 + $0x8] sm:$0xff] %vm25_vm0, %v477_v5 }
   0x2   :  { %v408_v3 = vpack.c.bf16 %v35_v1, %v34_v0  ;;  %v37_v4 = vld [vmem:[%s605_s1 + $0x18] sm:$0xff]  ;;  %26 = vst.msk [vmem:[#allocation2] sm:$0xff] %vm25_vm0, %v477_v5  ;;  %v38_v7 = vld [vmem:[%s605_s1 + $0x20] sm:$0xff]  ;;  %v39_v8 = vld [vmem:[%s605_s1 + $0x28] sm:$0xff] }
   0x3   :  { %v412_v6 = vpack.c.bf16 %v37_v4, %v36_v2  ;;  %v416_v9 = vpack.c.bf16 %v39_v8, %v38_v7  ;;  %v333_v10 = vld [vmem:[%s604_s0] sm:$0xff]  }
   0x4   :  { %409 = vmatprep.subr.bf16.mxu0 %v408_v3 }
   0x5   :  { %411 = vmatpush3.bf16.msra.mxu0 %v408_v3 }
   0x6   :  { %413 = vmatprep.subr.bf16.mxu0 %v412_v6 }
   0x7   :  { %10 = vsyncpa [#allocation4], 0  ;;  %v40_v11 = vld [vmem:[%s605_s1 + $0x30] sm:$0xff]  ;;  %v41_v12 = vld [vmem:[%s605_s1 + $0x38] sm:$0xff]  ;;  %v334_v13 = vunpack.c.l.bf16 %v333_v10  ;;  %v335_v27 = vunpack.c.h.bf16 %v333_v10  ;;  %vm228_vm1 = vcmask 1045504   ;;  %vm478_vm2 = vmmov 1  }
   0x8   :  { %v420_v14 = vpack.c.bf16 %v41_v12, %v40_v11  ;;  %v42_v15 = vld [vmem:[%s605_s1 + $0x40] sm:$0xff]  ;;  %v43_v16 = vld [vmem:[%s605_s1 + $0x48] sm:$0xff]  ;;  %v44_v18 = vld [vmem:[%s605_s1 + $0x50] sm:$0xff]  ;;  %vm221_vm4 = vcmask 113664   ;;  %s479_s8 = smov [#allocation3]  }
   0x9   :  { %415 = vmatpush3.bf16.msra.mxu0 %v412_v6  ;;  %393 = vmatprep.mubr.f32.mxu0 %v334_v13  ;;  %v424_v17 = vpack.c.bf16 %v43_v16, %v42_v15  ;;  %v45_v19 = vld [vmem:[%s605_s1 + $0x58] sm:$0xff]  ;;  %v46_v21 = vld [vmem:[%s605_s1 + $0x60] sm:$0xff]  ;;  %v47_v22 = vld [vmem:[%s605_s1 + $0x68] sm:$0xff]  ;;  %s316_s9 = sshll.u32 %s479_s8, 4  ;;  %s317_s9 = int_to_ptr.vmem [resolvable:$true] %s316_s9 }
   0xa   :  { %417 = vmatprep.subr.bf16.mxu0 %v416_v9  ;;  %v428_v20 = vpack.c.bf16 %v45_v19, %v44_v18  ;;  %v432_v23 = vpack.c.bf16 %v47_v22, %v46_v21  ;;  %v48_v24 = vld [vmem:[%s605_s1 + $0x70] sm:$0xff]  ;;  %v49_v25 = vld [vmem:[%s605_s1 + $0x78] sm:$0xff]  ;;  %v139_v28 = vld [vmem:[%s607_s3] sm:$0xff]  ;;  %s453_s10 = scalar_lea.vmem %s317_s9, 256  ;;  %p458_p1 = scmp.lt.s32.totalorder %s317_s9, %s317_s9 }
   0xb   :  { %v436_v26 = vpack.c.bf16 %v49_v25, %v48_v24  ;;  %396 = vmatprep.subr.mxu1 %v139_v28  ;;  %v135_v29 = vld [vmem:[%s608_s4] sm:$0xff]  ;;  %v136_v30 = vld [vmem:[%s608_s4 + $0x8] sm:$0x3f]  ;;  %vm574_vm3 = vmpackc.low %vm228_vm1, %vm478_vm2  ;;  %p454_p0 = scmp.ne.s32.totalorder %s317_s9, %s453_s10  ;;  %p459_p2 = scmp.lt.s32.totalorder %s453_s10, %s453_s10 }
   0xc   :  { %397 = vmatpush3.msra.mxu1 %v139_v28  ;;  %v440_v31 = vpack.c.bf16 %v136_v30, %v135_v29  ;;  %v29_v33 = vld [vmem:[#allocation2 + $0x8] sm:$0xff]  ;;  %v28_v34 = vld [vmem:[#allocation2] sm:$0xff] }
   0xd   :  { %419 = vmatpush3.bf16.msra.mxu0 %v416_v9  ;;  %v133_v40 = vld [vmem:[%s606_s2] sm:$0xff]  ;;  %v134_v42 = vld [vmem:[%s606_s2 + $0x8] sm:$0xff]  ;;  %p460_p3 = por %p459_p2, %p458_p1 }
   0xe   :  { %421 = vmatprep.subr.bf16.mxu0 %v420_v14  ;;  %442 = vmatprep.subr.msk.bf16.mxu1 %vm574_vm3, %v440_v31 }
   0xf   :  { %p461_p4 = pnand %p460_p3, %p454_p0 }
  0x11   :  { %423 = vmatpush3.bf16.msra.mxu0 %v420_v14 }
  0x12   :  { %425 = vmatprep.subr.bf16.mxu0 %v424_v17 }
  0x15   :  { %427 = vmatpush3.bf16.msra.mxu0 %v424_v17 }
  0x16   :  { %429 = vmatprep.subr.bf16.mxu0 %v428_v20 }
  0x19   :  { %431 = vmatpush3.bf16.msra.mxu0 %v428_v20 }
  0x1a   :  { %433 = vmatprep.subr.bf16.mxu0 %v432_v23 }
  0x1d   :  { %435 = vmatpush3.bf16.msra.mxu0 %v432_v23 }
  0x1e   :  { %437 = vmatprep.subr.bf16.mxu0 %v436_v26 }
  0x21   :  { %439 = vmatpush3.bf16.msra.mxu0 %v436_v26 }
  0x24   :  { %394 = vmatmul.mubr.f32.vlgmr.msra.gmra.mrb[0].mxu0 %v335_v27 }
  0xf7   :  { %v395_v35 = vpop.f32.mrb[0].mxu0 }
  0xf8   :  { %v126_v36 = vadd.f32 %v395_v35, %v29_v33  ;;  %v116_v37 = vpop.f32.mrb[1].mxu0 }
  0xf9   :  { %v125_v38 = vadd.f32 %v116_v37, %v28_v34 }
  0xfa   :  { %129 = vst.msk [vmem:[#allocation2 + $0x8] sm:$0xff] %vm25_vm0, %v126_v36 }
  0xfb   :  { %128 = vst.msk [vmem:[#allocation2] sm:$0xff] %vm25_vm0, %v125_v38 }
 0x101   :  { %v138_v41 = vld [vmem:[#allocation2 + $0x8] sm:$0xff] }
 0x102   :  { %v137_v39 = vld [vmem:[#allocation2] sm:$0xff] }
 0x103   :  { %398 = vmatprep.mubr.msk.f32.mxu1 %vm25_vm0, %v137_v39 }
 0x104   :  { %399 = vmatmul.mubr.msk.f32.vlgmr.msra.gmra.mrb[0].mxu1 %vm25_vm0, %v138_v41 }
 0x105   :  { %445 = vmatpush3.bf16.msk.msra.mxu1 %vm574_vm3, %v440_v31  ;;  %405 = vmatprep.mubr.msk.f32.mxu1 %vm221_vm4, %v133_v40 }
 0x10c   :  { %406 = vmatmul.mubr.msk.f32.vlgmr.msra.gmra.mrb[0].mxu1 %vm221_vm4, %v134_v42 }
 0x1df   :  { %v407_v43 = vpop.f32.mrb[0].mxu1 }
 0x1e0   :  { %v308_v44 = vmax.f32 %v407_v43, 0.0  ;;  %v298_v45 = vpop.f32.mrb[1].mxu1 }
 0x1e1   :  { %v307_v46 = vmax.f32 %v298_v45, 0.0 }
 0x1e2   :  { %310 = vst [vmem:[#allocation3 + $0x8] sm:$0xff] %v308_v44 }
 0x1e3   :  { %309 = vst [vmem:[#allocation3] sm:$0xff] %v307_v46 }
 0x1e4   :  { %464 = shalt.err (!%p461_p4)
}
 0x1e5   :  { %s465_s2 = scalar_lea.hbm %s609_s5, 256 }
 0x1e6   :  { %p466_p5 = scmp.ne.s32.totalorder %s609_s5, %s465_s2  ;;  %p469_p6 = scmp.lt.u32.totalorder %s465_s2, %s609_s5 }
 0x1e8   :  { %p471_p7 = pnand %p469_p6, %p466_p5 }
 0x1ea   :  { %474 = shalt.err (!%p471_p7)
}
 0x1eb   :  { %s480_s16 = smov 128   ;;  %s481_s17 = smov 8  }
 0x1ec   :  { %322 = dma.vmem_to_hbm [thread:$0]  %s317_s9, 256, %s609_s5, [#allocation4], %s480_s16, %s480_s16, %s481_s17  }
 0x1ed   :  { %475 = dma.done.wait [#allocation4], 256  }
 0x1ee   :  { %476 = vsyncadd [#allocation4], 4294967040 }
 0x1ef   :  { %326 = vsyncpa [#allocation4], 1 }

</bundles_post_ra>
